<compile_context>
chip_gen: v6e
topology: v6e:2x2x1
jax: 0.10.0
libtpu: 0.0.40
codegen_flags: <defaults>
</compile_context>

<pallas_src>
import jax
import jax.numpy as jnp
from jax.experimental import pallas as pl
from jax.experimental.pallas import tpu as pltpu


def _make_roll_kernel(k: int):
    """Kernel body: circularly shift the last axis by k (element i -> i + k mod T).

    Matches torch.roll(signal, shifts=num_shifts, dims=1) semantics.
    """

    def kernel(x_ref, o_ref):
        # Single XLU rotate on the lane axis; one load, one store per block.
        o_ref[...] = pltpu.roll(x_ref[...], shift=k, axis=1)

    return kernel


def _batch_tile(B: int, T: int, itemsize: int) -> int:
    """Pick a batch tile: ~2 MiB per block, rounded to the dtype's sublane tiling."""
    target_block_bytes = 2 * 1024 * 1024
    rows = max(1, target_block_bytes // max(1, T * itemsize))
    if rows >= B:
        return B  # whole batch fits in one comfortable block (full-dim block is always legal)
    # Native second-minor tiling: 8 rows for 32-bit, 16 for 16-bit, 32 for 8-bit.
    sublane = 8 * max(1, 4 // itemsize)
    tb = max(sublane, (rows // sublane) * sublane)
    return min(B, tb)


def time_shift_value(signal: jax.Array, sample_rate: float, shift: float) -> jax.Array:
    """Pallas implementation of TimeShiftValue.forward for a (batch, time) signal."""
    num_shifts = int(shift * sample_rate)  # int() truncation matches the PyTorch module
    B, T = signal.shape
    k = num_shifts % T  # Python modulo -> always in [0, T), same wrap as torch.roll

    if k == 0:
        # No-op shift: avoid a full HBM read+write round trip.
        return signal

    itemsize = jnp.dtype(signal.dtype).itemsize
    tb = _batch_tile(B, T, itemsize)
    grid = (pl.cdiv(B, tb),)

    kernel = _make_roll_kernel(k)

    out = pl.pallas_call(
        kernel,
        out_shape=jax.ShapeDtypeStruct((B, T), signal.dtype),
        grid_spec=pltpu.PrefetchScalarGridSpec(
            num_scalar_prefetch=0,
            grid=grid,
            in_specs=[pl.BlockSpec((tb, T), lambda i: (i, 0))],
            out_specs=pl.BlockSpec((tb, T), lambda i: (i, 0)),
        ),
        compiler_params=pltpu.CompilerParams(
            # Batch tiles are independent -> shard across TensorCores (v7x megacore).
            dimension_semantics=("parallel",),
        ),
        cost_estimate=pl.CostEstimate(
            flops=0,
            transcendentals=0,
            bytes_accessed=2 * B * T * itemsize,  # read + write, memory-bound
        ),
    )(signal)
    return out


if __name__ == "__main__":
    key = jax.random.PRNGKey(0)

    # Small deterministic example: batch=2, time=256, sample_rate=100, shift=0.37
    B, T = 2, 256
    sample_rate = 100
    shift = 0.37  # -> int(0.37 * 100) = 37 sample shift

    signal = jax.random.normal(key, (B, T), dtype=jnp.float32)

    out = time_shift_value(signal, sample_rate, shift)
    out = jax.block_until_ready(out)

    ref = jnp.roll(signal, int(shift * sample_rate), axis=1)
    assert out.shape == signal.shape and out.dtype == signal.dtype
    assert jnp.array_equal(out, ref), "Pallas roll mismatch vs reference (positive shift)"

    # Negative shift case (wraps the other way), still matches torch.roll semantics.
    shift_neg = -0.05  # -> int(-5) -> roll by -5
    out_neg = jax.block_until_ready(time_shift_value(signal, sample_rate, shift_neg))
    ref_neg = jnp.roll(signal, int(shift_neg * sample_rate), axis=1)
    assert jnp.array_equal(out_neg, ref_neg), "Pallas roll mismatch vs reference (negative shift)"

    # Slightly larger batch to exercise the batch-tiled (grid > 1) path.
    key2 = jax.random.PRNGKey(0)
    signal2 = jax.random.normal(key2, (16, 2048), dtype=jnp.float32)
    out2 = jax.block_until_ready(time_shift_value(signal2, sample_rate, shift))
    ref2 = jnp.roll(signal2, int(shift * sample_rate), axis=1)
    assert jnp.array_equal(out2, ref2), "Pallas roll mismatch vs reference (tiled batch)"

    # bf16 path exercises the 16-row sublane-tile rounding.
    signal3 = jax.random.normal(jax.random.PRNGKey(0), (32, 1024), dtype=jnp.bfloat16)
    out3 = jax.block_until_ready(time_shift_value(signal3, sample_rate, shift))
    ref3 = jnp.roll(signal3, int(shift * sample_rate), axis=1)
    assert jnp.array_equal(out3, ref3), "Pallas roll mismatch vs reference (bf16)"

    # Zero-shift short circuit.
    out4 = jax.block_until_ready(time_shift_value(signal, sample_rate, 0.0))
    assert jnp.array_equal(out4, signal), "Zero-shift should be identity"

    print("KERNEL_OK")
</pallas_src>

<mosaic_0001>
module attributes {stable_mosaic.version = 11 : i64} {
  func.func @kernel(%arg0: i32, %arg1: memref<2x256xf32, #tpu.memory_space<vmem>>, %arg2: memref<2x256xf32, #tpu.memory_space<vmem>>) attributes {dimension_semantics = [#tpu.dimension_semantics<parallel>], iteration_bounds = array<i64: 1>, scalar_prefetch = 0 : i64, scratch_operands = 0 : i64, tpu.core_type = #tpu.core_type<tc>, window_params = [{transform_indices = @transform_0, window_bounds = array<i64: 2, 256>}, {transform_indices = @transform_1, window_bounds = array<i64: 2, 256>}]} {
    %c0 = arith.constant 0 : index
    %c0_0 = arith.constant 0 : index
    %0 = vector.load %arg1[%c0, %c0_0] : memref<2x256xf32, #tpu.memory_space<vmem>>, vector<2x256xf32>
    %c37_i32 = arith.constant 37 : i32
    %1 = tpu.dynamic_rotate %0 by %c37_i32 dim 1 : vector<2x256xf32>, i32 -> vector<2x256xf32>
    %c0_1 = arith.constant 0 : index
    %c0_2 = arith.constant 0 : index
    %2 = vector.load %arg2[%c0_1, %c0_2] : memref<2x256xf32, #tpu.memory_space<vmem>>, vector<2x256xf32>
    tpu.vector_store %arg2[%c0_1, %c0_2], %1 {strides = array<i32>} : memref<2x256xf32, #tpu.memory_space<vmem>>, vector<2x256xf32>,
    return
  }
  func.func @transform_0(%arg0: i32) -> (i32, i32) {
    %c0_i32 = arith.constant 0 : i32
    %c0_i32_0 = arith.constant 0 : i32
    return %arg0, %c0_i32 : i32, i32
  }
  func.func @transform_1(%arg0: i32) -> (i32, i32) {
    %c0_i32 = arith.constant 0 : i32
    %c0_i32_0 = arith.constant 0 : i32
    return %arg0, %c0_i32 : i32, i32
  }
}

</mosaic_0001>

<bundles_post_ra>
// kernel: tpu_custom_call.1
= control target key start
LH: loop header
LB: loop body
LE: loop exit
PB: predicated region body
PF: predicated region fallthrough
CT: control target
= control target key end

     0   :  { %6 = vsyncpa [#allocation3], 0  ;;  %s137_s0 = inlined_call_operand.hbm [shape: f32[2,256], index: 0, kind: input, shape index: {}]   ;;  %s138_s1 = inlined_call_operand.hbm [shape: f32[2,256], index: 1, kind: output, shape index: {}]  }
   0x1   :  { %7 = vsyncpa [#allocation4], 0  ;;  %s118_s6 = smov [#allocation2]  }
   0x2   :  { %s14_s7 = sshll.u32 %s118_s6, 4  ;;  %s15_s7 = int_to_ptr.vmem [resolvable:$true] %s14_s7 }
   0x3   :  { %s82_s8 = scalar_lea.vmem %s15_s7, 64  ;;  %p87_p1 = scmp.lt.s32.totalorder %s15_s7, %s15_s7 }
   0x4   :  { %p83_p0 = scmp.ne.s32.totalorder %s15_s7, %s82_s8  ;;  %p88_p2 = scmp.lt.s32.totalorder %s82_s8, %s82_s8 }
   0x6   :  { %p89_p3 = por %p88_p2, %p87_p1 }
   0x8   :  { %p90_p4 = pnand %p89_p3, %p83_p0 }
   0xa   :  { %93 = shalt.err (!%p90_p4)
}
   0xb   :  { %17 = dma.hbm_to_vmem [thread:$0]  %s137_s0, 64, %s15_s7, [#allocation3]  }
   0xc   :  { %114 = dma.done.wait [#allocation3], 64  }
   0xd   :  { %115 = vsyncadd [#allocation3], 4294967232  ;;  %v69_v0 = vld.sshfl [vmem:[#allocation2] sm:$0x33 pattern:$0x76325410]  ;;  %v37_v2 = vlaneseq }
   0xe   :  { %s119_s11 = smov 37   ;;  %v30_v1 = vcombine.high %v69_v0, %v69_v0  ;;  %s120_s12 = smov [#allocation5]  }
   0xf   :  { %33 = vrot.lane.b32.xlu0 %v69_v0, %s119_s11  ;;  %v38_v3 = vand.u32 127, %v37_v2  ;;  %s60_s13 = sshll.u32 %s120_s12, 4  ;;  %s61_s13 = int_to_ptr.vmem [resolvable:$true] %s60_s13 }
  0x10   :  { %s94_s0 = scalar_lea.vmem %s61_s13, 64  ;;  %p99_p6 = scmp.lt.s32.totalorder %s61_s13, %s61_s13 }
  0x11   :  { %vm39_vm0 = vcmp.lt.s32.totalorder %v38_v3, 37  ;;  %p95_p5 = scmp.ne.s32.totalorder %s61_s13, %s94_s0  ;;  %p100_p7 = scmp.lt.s32.totalorder %s94_s0, %s94_s0 }
  0x13   :  { %35 = vrot.lane.b32.xlu0 %v30_v1, %s119_s11  ;;  %p101_p8 = por %p100_p7, %p99_p6 }
  0x15   :  { %p102_p9 = pnand %p101_p8, %p95_p5 }
  0x81   :  { %v34_v4 = vpop.permute.xlu0 %33 }
  0x85   :  { %v36_v5 = vpop.permute.xlu0 %35 }
  0x86   :  { %v40_v6 = vsel %vm39_vm0, %v34_v4, %v36_v5  ;;  %v41_v7 = vsel %vm39_vm0, %v36_v5, %v34_v4 }
  0x87   :  { %v44_v8 = vcombine.low %v41_v7, %v40_v6 }
  0x89   :  { %70 = vst.sshfl [vmem:[#allocation5] sm:$0x33 pattern:$0x76325410] %v44_v8 }
  0x8a   :  { %105 = shalt.err (!%p102_p9)
}
  0x8b   :  { %63 = dma.vmem_to_hbm [thread:$0]  %s61_s13, 64, %s138_s1, [#allocation4]  }
  0x8c   :  { %116 = dma.done.wait [#allocation4], 64  }
  0x8d   :  { %117 = vsyncadd [#allocation4], 4294967232 }
  0x8e   :  { %67 = vsyncpa [#allocation3], 1 }
  0x8f   :  { %68 = vsyncpa [#allocation4], 1 }

</bundles_post_ra>
